<compile_context>
chip_gen: v5e
topology: v5e:2x2
jax: 0.10.0
libtpu: 0.0.40
codegen_flags: <defaults>
</compile_context>

<pallas_src>
import jax
import jax.numpy as jnp
from jax.experimental import pallas as pl
from jax.experimental.pallas import tpu as pltpu

LANE = 128
SUBLANE = 8


def _round_up(x, m):
    return -(-x // m) * m


def _pad2(a, rows, cols):
    r, c = a.shape
    return jnp.pad(a, ((0, rows - r), (0, cols - c)))


def _choose_tile(bp, block_batch, min_steps=4):
    """Largest multiple-of-8 divisor of bp that is <= min(block_batch, ~bp/min_steps)."""
    target = min(block_batch, max(SUBLANE, _round_up(bp // min_steps, SUBLANE)))
    best = SUBLANE
    for tb in range(SUBLANE, min(target, bp) + 1, SUBLANE):
        if bp % tb == 0:
            best = tb
    return best


def odefunc_kernel(y_ref, w1_ref, b1_ref, w2_ref, b2_ref, o_ref):
    # Cast y in VMEM (no extra HBM pass); first matmul on the MXU with f32 accumulation.
    y = y_ref[...].astype(w1_ref.dtype)
    h = jnp.dot(y, w1_ref[...], preferred_element_type=jnp.float32)
    # Bias add + ReLU on the VPU in f32 (safe on v5e, which lacks bf16 VPU).
    h = jnp.maximum(h + b1_ref[...], 0.0)
    # Second matmul: cast activations to operand dtype (bf16 is MXU-native on all generations),
    # accumulate in f32, add bias in f32, store in the requested output dtype.
    o = jnp.dot(h.astype(w2_ref.dtype), w2_ref[...], preferred_element_type=jnp.float32)
    o_ref[...] = (o + b2_ref[...]).astype(o_ref.dtype)


def ode_func(t, y, w1, b1, w2, b2, *, compute_dtype=None, out_dtype=None, block_batch=1024):
    """Pallas equivalent of ODEFunc.forward(t, y).  `t` is unused (matches PyTorch)."""
    del t  # forward ignores t
    B, D = y.shape
    H = w1.shape[1]
    compute_dtype = y.dtype if compute_dtype is None else compute_dtype
    out_dtype = y.dtype if out_dtype is None else out_dtype

    # Pad only the tiny resident weights (hidden dim -> lane width). y / out stay at logical D.
    Hp = _round_up(H, LANE)
    w1p = _pad2(w1, D, Hp).astype(compute_dtype)
    w2p = _pad2(w2, Hp, D).astype(compute_dtype)
    b1p = _pad2(b1.reshape(1, H), 1, Hp).astype(jnp.float32)
    b2p = b2.reshape(1, D).astype(jnp.float32)

    if B <= block_batch:
        # Single grid-less call: whole arrays are one block (block == full dims, so no
        # (8,128) divisibility requirement). No padding, no slicing, no wrapper cast.
        return pl.pallas_call(
            odefunc_kernel,
            out_shape=jax.ShapeDtypeStruct((B, D), out_dtype),
        )(y, w1p, b1p, w2p, b2p)

    # Batch-tiled grid. Pad B only up to a multiple of 8 (never to a full tile);
    # the tile size is a divisor of the padded batch, so no zero-row tiles are computed.
    Bp = _round_up(B, SUBLANE)
    yp = y if Bp == B else jnp.pad(y, ((0, Bp - B), (0, 0)))
    TB = _choose_tile(Bp, block_batch)
    out = pl.pallas_call(
        odefunc_kernel,
        out_shape=jax.ShapeDtypeStruct((Bp, D), out_dtype),
        grid=(Bp // TB,),
        in_specs=[
            pl.BlockSpec((TB, D), lambda i: (i, 0)),   # y tile (logical D, no lane padding)
            pl.BlockSpec((D, Hp), lambda i: (0, 0)),   # W1 (resident in VMEM)
            pl.BlockSpec((1, Hp), lambda i: (0, 0)),   # b1 (resident)
            pl.BlockSpec((Hp, D), lambda i: (0, 0)),   # W2 (resident)
            pl.BlockSpec((1, D), lambda i: (0, 0)),    # b2 (resident)
        ],
        out_specs=pl.BlockSpec((TB, D), lambda i: (i, 0)),
        compiler_params=pltpu.CompilerParams(
            dimension_semantics=("parallel",)),        # v7x: shards batch tiles across 2 TCs
    )(yp, w1p, b1p, w2p, b2p)
    return out if Bp == B else out[:B]


def init_params(key, input_dim, hidden=50, dtype=jnp.float32):
    """Deterministic init mimicking nn.Linear default (uniform +/- 1/sqrt(fan_in))."""
    k1, k2, k3, k4 = jax.random.split(key, 4)
    bound1 = 1.0 / jnp.sqrt(input_dim)
    bound2 = 1.0 / jnp.sqrt(hidden)
    w1 = jax.random.uniform(k1, (input_dim, hidden), dtype, -bound1, bound1)
    b1 = jax.random.uniform(k2, (1, hidden), dtype, -bound1, bound1)
    w2 = jax.random.uniform(k3, (hidden, input_dim), dtype, -bound2, bound2)
    b2 = jax.random.uniform(k4, (1, input_dim), dtype, -bound2, bound2)
    return w1, b1, w2, b2


if __name__ == "__main__":
    key = jax.random.PRNGKey(0)
    ky, kp, kb = jax.random.split(key, 3)

    input_dim, hidden = 32, 50
    w1, b1, w2, b2 = init_params(kp, input_dim, hidden)
    t = jnp.float32(0.0)  # unused by forward

    def ref(y, dtype=jnp.float32):
        h = jnp.maximum(
            jnp.dot(y.astype(dtype), w1.astype(dtype),
                    preferred_element_type=jnp.float32) + b1, 0.0)
        return jnp.dot(h.astype(dtype), w2.astype(dtype),
                       preferred_element_type=jnp.float32) + b2

    # Case 1: small batch, f32 operands, single grid-less call (no padding / slicing at all).
    y_small = jax.random.normal(ky, (8, input_dim), jnp.float32)
    out_small = jax.block_until_ready(ode_func(t, y_small, w1, b1, w2, b2))
    assert out_small.shape == y_small.shape
    assert jnp.allclose(out_small, ref(y_small), atol=1e-5, rtol=1e-5)

    # Case 2: batch-tiled "parallel" grid, bf16 MXU operands + f32 accumulation,
    # batch not a multiple of the tile (remainder handled with <=7 rows of padding).
    y_big = jax.random.normal(kb, (521, input_dim), jnp.float32)
    out_big = jax.block_until_ready(
        ode_func(t, y_big, w1, b1, w2, b2,
                 compute_dtype=jnp.bfloat16, block_batch=128))
    assert out_big.shape == y_big.shape
    assert jnp.allclose(out_big, ref(y_big, jnp.bfloat16), atol=5e-2, rtol=5e-2)

    print("KERNEL_OK")
</pallas_src>

<mosaic_0001>
module attributes {stable_mosaic.version = 11 : i64} {
  func.func @odefunc_kernel(%arg0: memref<8x32xf32, #tpu.memory_space<vmem>>, %arg1: memref<32x128xf32, #tpu.memory_space<vmem>>, %arg2: memref<1x128xf32, #tpu.memory_space<vmem>>, %arg3: memref<128x32xf32, #tpu.memory_space<vmem>>, %arg4: memref<1x32xf32, #tpu.memory_space<vmem>>, %arg5: memref<8x32xf32, #tpu.memory_space<vmem>>) attributes {dimension_semantics = [], scalar_prefetch = 0 : i64, scratch_operands = 0 : i64, tpu.core_type = #tpu.core_type<tc>} {
    %c0 = arith.constant 0 : index
    %c0_0 = arith.constant 0 : index
    %0 = vector.load %arg0[%c0, %c0_0] : memref<8x32xf32, #tpu.memory_space<vmem>>, vector<8x32xf32>
    %c0_1 = arith.constant 0 : index
    %c0_2 = arith.constant 0 : index
    %1 = vector.load %arg1[%c0_1, %c0_2] : memref<32x128xf32, #tpu.memory_space<vmem>>, vector<32x128xf32>
    %cst = arith.constant dense<0.000000e+00> : vector<8x128xf32>
    %2 = tpu.matmul %0, %1, %cst {dimension_numbers = #tpu.dot_dimension_numbers<[1], [0], [0], [1], [0, 0, 1, 1], [], []>} : vector<8x32xf32>, vector<32x128xf32>, vector<8x128xf32> -> vector<8x128xf32>
    %c0_3 = arith.constant 0 : index
    %c0_4 = arith.constant 0 : index
    %3 = vector.load %arg2[%c0_3, %c0_4] : memref<1x128xf32, #tpu.memory_space<vmem>>, vector<1x128xf32>
    %4 = vector.broadcast %3 : vector<1x128xf32> to vector<8x128xf32>
    %5 = arith.addf %2, %4 : vector<8x128xf32>
    %cst_5 = arith.constant 0.000000e+00 : f32
    %6 = vector.broadcast %cst_5 : f32 to vector<8x128xf32>
    %7 = arith.maximumf %5, %6 : vector<8x128xf32>
    %c0_6 = arith.constant 0 : index
    %c0_7 = arith.constant 0 : index
    %8 = vector.load %arg3[%c0_6, %c0_7] : memref<128x32xf32, #tpu.memory_space<vmem>>, vector<128x32xf32>
    %cst_8 = arith.constant dense<0.000000e+00> : vector<8x32xf32>
    %9 = tpu.matmul %7, %8, %cst_8 {dimension_numbers = #tpu.dot_dimension_numbers<[1], [0], [0], [1], [0, 0, 1, 1], [], []>} : vector<8x128xf32>, vector<128x32xf32>, vector<8x32xf32> -> vector<8x32xf32>
    %c0_9 = arith.constant 0 : index
    %c0_10 = arith.constant 0 : index
    %10 = vector.load %arg4[%c0_9, %c0_10] : memref<1x32xf32, #tpu.memory_space<vmem>>, vector<1x32xf32>
    %11 = vector.broadcast %10 : vector<1x32xf32> to vector<8x32xf32>
    %12 = arith.addf %9, %11 : vector<8x32xf32>
    %c0_11 = arith.constant 0 : index
    %c0_12 = arith.constant 0 : index
    %13 = vector.load %arg5[%c0_11, %c0_12] : memref<8x32xf32, #tpu.memory_space<vmem>>, vector<8x32xf32>
    tpu.vector_store %arg5[%c0_11, %c0_12], %12 {strides = array<i32>} : memref<8x32xf32, #tpu.memory_space<vmem>>, vector<8x32xf32>,
    return
  }
}

</mosaic_0001>

<bundles_post_ra>
// kernel: tpu_custom_call.1
= control target key start
LH: loop header
LB: loop body
LE: loop exit
PB: predicated region body
PF: predicated region fallthrough
CT: control target
= control target key end

     0   :  { %vm30_vm0 = vcmask 261120   ;;  %s247_s0 = inlined_call_operand.vmem [shape: f32[8,32], index: 0, kind: input, shape index: {}]   ;;  %s248_s1 = inlined_call_operand.vmem [shape: f32[32,128], index: 1, kind: input, shape index: {}]   ;;  %s249_s2 = inlined_call_operand.vmem [shape: f32[1,128], index: 2, kind: input, shape index: {}]   ;;  %s250_s3 = inlined_call_operand.vmem [shape: f32[128,32], index: 3, kind: input, shape index: {}]   ;;  %s251_s4 = inlined_call_operand.vmem [shape: f32[1,32], index: 4, kind: input, shape index: {}]   ;;  %s252_s5 = inlined_call_operand.hbm [shape: f32[8,32], index: 5, kind: output, shape index: {}]  }
   0x1   :  { %v25_v0 = vld [vmem:[%s248_s1 + $0x18] sm:$0xff]  ;;  %v24_v1 = vld [vmem:[%s248_s1 + $0x10] sm:$0xff]  ;;  %v23_v3 = vld [vmem:[%s248_s1 + $0x8] sm:$0xff] }
   0x2   :  { %46 = vmatpush.msra.mxu0 %v25_v0  ;;  %v70_v2 = vld [vmem:[%s250_s3 + $0x78] sm:$0xff]  ;;  %v69_v4 = vld [vmem:[%s250_s3 + $0x70] sm:$0xff]  ;;  %v68_v5 = vld [vmem:[%s250_s3 + $0x68] sm:$0xff] }
   0x3   :  { %75 = vmatpush.msra.mxu1 %v70_v2  ;;  %v22_v6 = vld [vmem:[%s248_s1] sm:$0xff]  ;;  %v66_v9 = vld [vmem:[%s250_s3 + $0x58] sm:$0xff] }
   0x4   :  { %47 = vmatpush.msra.mxu0 %v24_v1  ;;  %v21_v7 = vld [vmem:[%s247_s0] sm:$0xff] }
   0x5   :  { %76 = vmatpush.msra.mxu1 %v69_v4  ;;  %v67_v8 = vld [vmem:[%s250_s3 + $0x60] sm:$0xff] }
   0x6   :  { %48 = vmatpush.msra.mxu0 %v23_v3 }
   0x7   :  { %77 = vmatpush.msra.mxu1 %v68_v5 }
   0x8   :  { %49 = vmatpush.msra.mxu0 %v22_v6 }
   0x9   :  { %10 = vsyncpa [#allocation3], 0  ;;  %112 = vmatmul.msk.f32.vlgmr.msra.gmra.mxu0 %vm30_vm0, %v21_v7  ;;  %78 = vmatpush.msra.mxu1 %v67_v8  ;;  %v65_v10 = vld [vmem:[%s250_s3 + $0x50] sm:$0xff]  ;;  %v64_v11 = vld [vmem:[%s250_s3 + $0x48] sm:$0xff]  ;;  %s142_s12 = smov [#allocation2]   ;;  %s103_s14 = sshll.u32 %s252_s5, 4  ;;  %s104_s14 = int_to_ptr.hbm [resolvable:$true] %s103_s14 }
   0xa   :  { %v63_v12 = vld [vmem:[%s250_s3 + $0x40] sm:$0xff]  ;;  %v62_v13 = vld [vmem:[%s250_s3 + $0x38] sm:$0xff]  ;;  %v61_v14 = vld [vmem:[%s250_s3 + $0x30] sm:$0xff]  ;;  %s101_s1 = sshll.u32 %s142_s12, 4  ;;  %s102_s1 = int_to_ptr.vmem [resolvable:$true] %s101_s1 }
   0xb   :  { %79 = vmatpush.msra.mxu1 %v66_v9  ;;  %v60_v15 = vld [vmem:[%s250_s3 + $0x28] sm:$0xff]  ;;  %v59_v16 = vld [vmem:[%s250_s3 + $0x20] sm:$0xff]  ;;  %v58_v17 = vld [vmem:[%s250_s3 + $0x18] sm:$0xff] }
   0xc   :  { %v57_v18 = vld [vmem:[%s250_s3 + $0x10] sm:$0xff]  ;;  %v56_v19 = vld [vmem:[%s250_s3 + $0x8] sm:$0xff]  ;;  %v55_v20 = vld [vmem:[%s250_s3] sm:$0xff] }
   0xd   :  { %80 = vmatpush.msra.mxu1 %v65_v10  ;;  %v114_v21 = vld [vmem:[%s249_s2] ss:$0 sm:$0xff] }
   0xe   :  { %v115_v25 = vld [vmem:[%s251_s4] ss:$0 sm:$0xff] }
   0xf   :  { %81 = vmatpush.msra.mxu1 %v64_v11 }
  0x11   :  { %82 = vmatpush.msra.mxu1 %v63_v12 }
  0x13   :  { %83 = vmatpush.msra.mxu1 %v62_v13 }
  0x15   :  { %84 = vmatpush.msra.mxu1 %v61_v14 }
  0x17   :  { %85 = vmatpush.msra.mxu1 %v60_v15 }
  0x19   :  { %86 = vmatpush.msra.mxu1 %v59_v16 }
  0x1b   :  { %87 = vmatpush.msra.mxu1 %v58_v17 }
  0x1d   :  { %88 = vmatpush.msra.mxu1 %v57_v18 }
  0x1f   :  { %89 = vmatpush.msra.mxu1 %v56_v19 }
  0x21   :  { %90 = vmatpush.msra.mxu1 %v55_v20 }
  0x86   :  { %v51_v22 = vpop.f32.mrf.mxu0 }
  0x87   :  { %v52_v23 = vadd.f32 %v114_v21, %v51_v22 }
  0x89   :  { %v54_v24 = vmax.f32 %v52_v23, 0.0 }
  0x8b   :  { %91 = vmatmul.f32.vlgmr.msra.gmra.mxu1 %v54_v24 }
 0x108   :  { %v92_v26 = vpop.f32.mrf.mxu1 }
 0x109   :  { %v93_v27 = vadd.f32 %v115_v25, %v92_v26 }
 0x10b   :  { %95 = vst.msk [vmem:[#allocation2] sm:$0xff] %vm30_vm0, %v93_v27 }
 0x10c   :  { %106 = dma.vmem_to_hbm [thread:$0]  %s102_s1, 128, %s104_s14, [#allocation3]  }
 0x10d   :  { %140 = dma.done.wait [#allocation3], 128  }
 0x10e   :  { %141 = vsyncadd [#allocation3], 4294967168 }
 0x10f   :  { %111 = vsyncpa [#allocation3], 1 }

</bundles_post_ra>
